<compile_context>
chip_gen: v6e
topology: v6e:2x2x1
jax: 0.10.0
libtpu: 0.0.40
codegen_flags: <defaults>
</compile_context>

<pallas_src>
import jax
import jax.numpy as jnp
import numpy as np
from jax.experimental import pallas as pl
from jax.experimental.pallas import tpu as pltpu


def _decoder_passthrough_kernel(in_ref, out_ref):
    # Abstract Decoder performs no transformation; identity on the VMEM tile.
    # A concrete subclass's decode math (e.g. an MXU combination over the
    # ec_k + ec_r coded units) would replace this body.  If that math needs a
    # contraction, add a third "arbitrary" grid axis with a pl.when-gated f32
    # VMEM accumulator — do not fold a reduction into these parallel axes.
    out_ref[...] = in_ref[...]


def _tpu_memory_config():
    """Generation-aware tile target and scoped-VMEM budget."""
    vmem = 64 << 20  # conservative default (v7x-sized) if query unavailable
    try:
        info = pltpu.get_tpu_info()
        vmem = int(getattr(info, "vmem_capacity_bytes", vmem))
    except Exception:
        pass
    if vmem >= (100 << 20):
        # v5e / v6e: 128 MiB physical VMEM — larger tiles amortize the
        # ~0.35 us/step overhead to <3%; raise the scoped limit explicitly
        # (v5e's default is only 16 MiB).
        return {"target_tile_bytes": 8 << 20, "vmem_limit_bytes": 64 << 20}
    # v7x: 64 MiB physical VMEM — 4 MiB tiles keep the double-buffered
    # in+out footprint (4x tile = 16 MiB) inside the 32 MiB scoped budget.
    return {"target_tile_bytes": 4 << 20, "vmem_limit_bytes": 32 << 20}


def _divisors_desc(n):
    divs = set()
    d = 1
    while d * d <= n:
        if n % d == 0:
            divs.add(d)
            divs.add(n // d)
        d += 1
    return sorted(divs, reverse=True)


def _pick_tiles(rows, cols, itemsize, target_bytes, min_steps=4):
    """Pick (tr, tc) tile sizes for an aligned (rows, cols) slab.

    Guarantees:
      * tr is a multiple of the dtype's sublane packing, tc a multiple of 128,
      * tr | rows and tc | cols (no ragged / masked partial tiles),
      * tr * tc * itemsize <= target_bytes (byte cap actually enforced, so the
        2x-in + 2x-out double buffers stay within the scoped-VMEM budget),
      * grid is split to >= min_steps steps when alignment allows (feeds
        v7x's two TensorCores and keeps the DMA pipeline busy).
    """
    sub = max(8, 32 // itemsize)  # f32 -> 8, bf16 -> 16, int8 -> 32 sublanes
    col_divs = _divisors_desc(cols // 128)   # candidate tc = 128 * d
    row_divs = _divisors_desc(rows // sub)   # candidate tr = sub * d

    # Column tile: largest 128-multiple divisor whose single-sublane strip
    # fits the budget (d=1, i.e. tc=128, always fits: sub*128*itemsize<=4KiB).
    tc = 128 * max(
        (d for d in col_divs if sub * 128 * d * itemsize <= target_bytes),
        default=1,
    )
    # Row tile: largest sublane-multiple divisor with (tr, tc) under budget.
    tr = sub * max(
        (d for d in row_divs if sub * d * tc * itemsize <= target_bytes),
        default=1,
    )

    def steps(tr_, tc_):
        return (rows // tr_) * (cols // tc_)

    # Prefer >= min_steps grid steps: shrink rows first, then columns, never
    # below the alignment minimum. Degrades gracefully for tiny inputs.
    if steps(tr, tc) < min_steps:
        for d in row_divs:
            cand = sub * d
            if cand <= tr and steps(cand, tc) >= min_steps:
                tr = cand
                break
        else:
            tr = sub * row_divs[-1]  # smallest legal row tile
    if steps(tr, tc) < min_steps:
        for d in col_divs:
            cand = 128 * d
            if cand <= tc and steps(tr, cand) >= min_steps:
                tc = cand
                break

    return tr, tc


def _pallas_identity(x):
    """Tiled, lane-dense, pipelined identity — template for concrete decoders."""
    b, c, h, w = x.shape
    itemsize = x.dtype.itemsize
    sub = max(8, 32 // itemsize)
    total = b * c * h * w

    # Prefer the natural lane-dense (b*c, h*w) slab; otherwise re-flatten to a
    # (total//128, 128) slab when the element count allows; otherwise skip the
    # template launch entirely (identity — nothing to compute).
    rows, cols = b * c, h * w
    if rows % sub != 0 or cols % 128 != 0:
        if total % (sub * 128) == 0:
            rows, cols = total // 128, 128
        else:
            # TODO(synk): misaligned shape with no concrete decode math in the
            # abstract reference — return the input rather than launching an
            # unpipelined full-array block that could exceed VMEM.
            return x

    cfg = _tpu_memory_config()
    tr, tc = _pick_tiles(rows, cols, itemsize, cfg["target_tile_bytes"])
    grid = (rows // tr, cols // tc)

    x2d = x.reshape(rows, cols)

    out2d = pl.pallas_call(
        _decoder_passthrough_kernel,
        out_shape=jax.ShapeDtypeStruct((rows, cols), x.dtype),
        grid_spec=pltpu.PrefetchScalarGridSpec(
            num_scalar_prefetch=0,
            grid=grid,
            in_specs=[pl.BlockSpec((tr, tc), lambda i, j: (i, j))],
            out_specs=pl.BlockSpec((tr, tc), lambda i, j: (i, j)),
        ),
        # Pure memory traffic (read N bytes + write N bytes); tell XLA so it
        # can schedule neighbors around the call.
        cost_estimate=pl.CostEstimate(
            flops=0,
            transcendentals=0,
            bytes_accessed=2 * rows * cols * itemsize,
        ),
        compiler_params=pltpu.CompilerParams(
            # Tiles are independent -> shard across v7x's 2 TensorCores;
            # harmless on single-TC v5e/v6e.
            dimension_semantics=("parallel", "parallel"),
            vmem_limit_bytes=cfg["vmem_limit_bytes"],
        ),
    )(x2d)

    return out2d.reshape(b, c, h, w)


class Decoder:
    """JAX/Pallas mirror of the abstract PyTorch Decoder."""

    def __init__(self, ec_k, ec_r, in_dim):
        # in_dim: (batch, num_channels, height, width)
        self.ec_k = ec_k
        self.ec_r = ec_r
        self.in_dim = tuple(in_dim)
        # No learnable parameters are declared in the reference __init__.

    def forward(self, in_data, run_pallas_template=False):
        # The reference `forward` is abstract (`pass`) -> identity.  The
        # fastest correct implementation moves zero bytes: return the input.
        if not run_pallas_template:
            return in_data
        # Template path for concrete subclasses: exercises the tiled,
        # pipelined Pallas structure where real decode math would live.
        return _pallas_identity(in_data)

    def __call__(self, in_data, **kwargs):
        return self.forward(in_data, **kwargs)

    def combine_labels(self, in_data):
        # TODO(synk): abstract in the reference module (`pass`); no semantics
        # to implement here.
        raise NotImplementedError(
            "combine_labels is abstract in the reference Decoder"
        )


if __name__ == "__main__":
    key = jax.random.PRNGKey(0)
    batch, channels, height, width = 2, 4, 16, 16  # consistent with in_dim
    ec_k, ec_r = 2, 1

    x = jax.random.normal(key, (batch, channels, height, width), dtype=jnp.float32)
    x_host = np.asarray(jax.device_get(x))

    dec = Decoder(ec_k=ec_k, ec_r=ec_r, in_dim=[batch, channels, height, width])

    # Default (recommended) path: abstract forward == identity, no kernel
    # launch, zero HBM traffic.
    y_fast = jax.block_until_ready(dec(x))
    assert y_fast.shape == x_host.shape and y_fast.dtype == x_host.dtype
    assert np.array_equal(np.asarray(jax.device_get(y_fast)), x_host)

    # Template path: run the Pallas kernel once to validate the tiled,
    # pipelined structure a concrete subclass would build on.
    y_kernel = jax.block_until_ready(dec(x, run_pallas_template=True))
    assert y_kernel.shape == x_host.shape and y_kernel.dtype == x_host.dtype
    assert np.array_equal(np.asarray(jax.device_get(y_kernel)), x_host)

    print("KERNEL_OK")
</pallas_src>

<mosaic_0001>
module attributes {stable_mosaic.version = 11 : i64} {
  func.func @_decoder_passthrough_kernel(%arg0: i32, %arg1: i32, %arg2: memref<8x256xf32, #tpu.memory_space<vmem>>, %arg3: memref<8x256xf32, #tpu.memory_space<vmem>>) attributes {dimension_semantics = [#tpu.dimension_semantics<parallel>, #tpu.dimension_semantics<parallel>], iteration_bounds = array<i64: 1, 1>, scalar_prefetch = 0 : i64, scratch_operands = 0 : i64, tpu.core_type = #tpu.core_type<tc>, window_params = [{transform_indices = @transform_0, window_bounds = array<i64: 8, 256>}, {transform_indices = @transform_1, window_bounds = array<i64: 8, 256>}]} {
    %c0 = arith.constant 0 : index
    %c0_0 = arith.constant 0 : index
    %0 = vector.load %arg2[%c0, %c0_0] : memref<8x256xf32, #tpu.memory_space<vmem>>, vector<8x256xf32>
    %c0_1 = arith.constant 0 : index
    %c0_2 = arith.constant 0 : index
    %1 = vector.load %arg3[%c0_1, %c0_2] : memref<8x256xf32, #tpu.memory_space<vmem>>, vector<8x256xf32>
    tpu.vector_store %arg3[%c0_1, %c0_2], %0 {strides = array<i32>} : memref<8x256xf32, #tpu.memory_space<vmem>>, vector<8x256xf32>,
    return
  }
  func.func @transform_0(%arg0: i32, %arg1: i32) -> (i32, i32) {
    %c0_i32 = arith.constant 0 : i32
    return %arg0, %arg1 : i32, i32
  }
  func.func @transform_1(%arg0: i32, %arg1: i32) -> (i32, i32) {
    %c0_i32 = arith.constant 0 : i32
    return %arg0, %arg1 : i32, i32
  }
}

</mosaic_0001>

<bundles_post_ra>
// kernel: tpu_custom_call.1
= control target key start
LH: loop header
LB: loop body
LE: loop exit
PB: predicated region body
PF: predicated region fallthrough
CT: control target
= control target key end

     0   :  { %6 = vsyncpa [#allocation3], 0  ;;  %s104_s0 = inlined_call_operand.hbm [shape: f32[8,256], index: 0, kind: input, shape index: {}]   ;;  %s105_s1 = inlined_call_operand.hbm [shape: f32[8,256], index: 1, kind: output, shape index: {}]  }
   0x1   :  { %7 = vsyncpa [#allocation4], 0  ;;  %s86_s6 = smov [#allocation2]  }
   0x2   :  { %s14_s7 = sshll.u32 %s86_s6, 4  ;;  %s15_s7 = int_to_ptr.vmem [resolvable:$true] %s14_s7 }
   0x3   :  { %s50_s8 = scalar_lea.vmem %s15_s7, 256  ;;  %p55_p1 = scmp.lt.s32.totalorder %s15_s7, %s15_s7 }
   0x4   :  { %p51_p0 = scmp.ne.s32.totalorder %s15_s7, %s50_s8  ;;  %p56_p2 = scmp.lt.s32.totalorder %s50_s8, %s50_s8 }
   0x6   :  { %p57_p3 = por %p56_p2, %p55_p1 }
   0x8   :  { %p58_p4 = pnand %p57_p3, %p51_p0 }
   0xa   :  { %61 = shalt.err (!%p58_p4)
}
   0xb   :  { %17 = dma.hbm_to_vmem [thread:$0]  %s104_s0, 256, %s15_s7, [#allocation3]  }
   0xc   :  { %82 = dma.done.wait [#allocation3], 256  }
   0xd   :  { %83 = vsyncadd [#allocation3], 4294967040  ;;  %s87_s11 = smov [#allocation5]   ;;  %v21_v0 = vld [vmem:[#allocation2] sm:$0xff]  ;;  %v22_v1 = vld [vmem:[#allocation2 + $0x8] sm:$0xff] }
   0xe   :  { %s31_s12 = sshll.u32 %s87_s11, 4  ;;  %23 = vst [vmem:[#allocation5] sm:$0xff] %v21_v0  ;;  %24 = vst [vmem:[#allocation5 + $0x8] sm:$0xff] %v22_v1  ;;  %s32_s12 = int_to_ptr.vmem [resolvable:$true] %s31_s12 }
   0xf   :  { %s62_s13 = scalar_lea.vmem %s32_s12, 256  ;;  %p67_p6 = scmp.lt.s32.totalorder %s32_s12, %s32_s12 }
  0x10   :  { %p63_p5 = scmp.ne.s32.totalorder %s32_s12, %s62_s13  ;;  %p68_p7 = scmp.lt.s32.totalorder %s62_s13, %s62_s13 }
  0x12   :  { %p69_p8 = por %p68_p7, %p67_p6 }
  0x14   :  { %p70_p9 = pnand %p69_p8, %p63_p5 }
  0x16   :  { %73 = shalt.err (!%p70_p9)
}
  0x17   :  { %34 = dma.vmem_to_hbm [thread:$0]  %s32_s12, 256, %s105_s1, [#allocation4]  }
  0x18   :  { %84 = dma.done.wait [#allocation4], 256  }
  0x19   :  { %85 = vsyncadd [#allocation4], 4294967040 }
  0x1a   :  { %38 = vsyncpa [#allocation3], 1 }
  0x1b   :  { %39 = vsyncpa [#allocation4], 1 }

</bundles_post_ra>
